<compile_context>
chip_gen: v5e
topology: v5e:2x2
jax: 0.10.0
libtpu: 0.0.40
codegen_flags: <defaults>
</compile_context>

<pallas_src>
import functools

import jax
import jax.numpy as jnp
from jax.experimental import pallas as pl
from jax.experimental.pallas import tpu as pltpu

_LANE = 128
_SUBLANE = 8
_BM = 256          # batch tile once the batch is large enough to use the MXU


def _round_up(x, m):
    return ((x + m - 1) // m) * m


def _pad2d(a, rows, cols, dtype):
    out = jnp.zeros((rows, cols), dtype)
    return out.at[: a.shape[0], : a.shape[1]].set(a.astype(dtype))


# ----------------------------------------------------------------------------
# Fused, jitted forward over a segment of affine(/tanh) layers.
# ----------------------------------------------------------------------------
@functools.lru_cache(maxsize=None)
def _get_fused_fn(descs):
    """descs: tuple of (takes_two: bool, activation: str|None, out_dim: int)."""
    needs_x2 = any(t for (t, _, _) in descs)
    n_layers = len(descs)
    out_dim = descs[-1][2]

    @jax.jit
    def fn(x1, x2, params):
        m, d1 = x1.shape

        # ---- static layout info (shapes are static under trace) ----
        k1_dims, n_dims = [], []
        k2p = 0
        for (t, _, _), p in zip(descs, params):
            w1 = p[0]
            k1_dims.append(w1.shape[0])
            n_dims.append(w1.shape[1])
            if t:
                k2p = p[1].shape[0]
        n_max = max(n_dims)
        k1p0 = k1_dims[0]
        kin = k1p0 + (k2p if needs_x2 else 0)

        # batch tiling: full (sublane-padded) batch when small, 256-row tiles
        # with a "parallel" grid (megacore on v7x) when large.
        bm = _BM if m >= _BM else _round_up(m, _SUBLANE)
        mp = _round_up(m, bm)

        # ---- pack operands (XLA fuses this glue around the custom call) ----
        xin = jnp.zeros((mp, kin), jnp.bfloat16)
        xin = xin.at[:m, :d1].set(x1.astype(jnp.bfloat16))
        if needs_x2:
            d2 = x2.shape[1]
            xin = xin.at[:m, k1p0:k1p0 + d2].set(x2.astype(jnp.bfloat16))

        w_rows, b_cols, off1, off2 = [], [], [], []
        row = 0
        for (t, _, _), p in zip(descs, params):
            if t:
                w1, w2, b = p
            else:
                (w1, b), w2 = p, None
            pad_n = n_max - w1.shape[1]
            off1.append(row)
            w_rows.append(jnp.pad(w1, ((0, 0), (0, pad_n))))
            row += w1.shape[0]
            if t:
                off2.append(row)
                w_rows.append(jnp.pad(w2, ((0, 0), (0, pad_n))))
                row += w2.shape[0]
            else:
                off2.append(-1)
            b_cols.append(jnp.pad(b, ((0, 0), (0, pad_n))))
        w_all = jnp.concatenate(w_rows, axis=0)   # (sum K, n_max)      bf16
        b_all = jnp.concatenate(b_cols, axis=1)   # (1, n_layers*n_max) f32

        # ---- fused kernel: whole layer chain stays in VMEM ----
        def kernel(xin_ref, w_ref, b_ref, o_ref):
            x1_bf = xin_ref[:, :k1p0]
            if needs_x2:
                x2_bf = xin_ref[:, k1p0:k1p0 + k2p]

            # Hoisted x2-side matmuls: independent of the serial layer chain,
            # so their MXU latency overlaps the cur-dependent dots below.
            x2_contrib = [None] * n_layers
            for li, (t, _, _) in enumerate(descs):
                if t:
                    w2 = w_ref[off2[li]:off2[li] + k2p, :]
                    x2_contrib[li] = jnp.dot(
                        x2_bf, w2, preferred_element_type=jnp.float32)

            cur_bf = x1_bf
            cur_f32 = None
            for li, (t, act, _) in enumerate(descs):
                k1 = k1_dims[li]
                w1 = w_ref[off1[li]:off1[li] + k1, :]
                acc = jnp.dot(cur_bf[:, :k1], w1,
                              preferred_element_type=jnp.float32)
                if t:
                    acc = acc + x2_contrib[li]
                acc = acc + b_ref[:, li * n_max:(li + 1) * n_max]   # f32 epilogue
                if act == "tanh":
                    acc = jnp.tanh(acc)                             # f32 (EUP)
                cur_f32 = acc
                if li + 1 < n_layers:
                    cur_bf = acc.astype(jnp.bfloat16)
            o_ref[...] = cur_f32.astype(o_ref.dtype)

        out = pl.pallas_call(
            kernel,
            out_shape=jax.ShapeDtypeStruct((mp, n_max), jnp.float32),
            grid_spec=pltpu.PrefetchScalarGridSpec(
                num_scalar_prefetch=0,
                grid=(mp // bm,),
                in_specs=[
                    pl.BlockSpec((bm, kin), lambda i: (i, 0)),
                    pl.BlockSpec(w_all.shape, lambda i: (0, 0)),   # resident
                    pl.BlockSpec(b_all.shape, lambda i: (0, 0)),   # resident
                ],
                out_specs=pl.BlockSpec((bm, n_max), lambda i: (i, 0)),
            ),
            compiler_params=pltpu.CompilerParams(
                dimension_semantics=("parallel",)),
        )(xin, w_all, b_all)
        return out[:m, :out_dim]

    return fn


def _fused_forward(x1, x2, layers):
    """layers: list of (desc, params) pairs from module.fused_layer()."""
    descs = tuple(d for (d, _) in layers)
    params = tuple(p for (_, p) in layers)
    needs_x2 = any(d[0] for d in descs)
    fn = _get_fused_fn(descs)
    return fn(x1, x2 if needs_x2 else None, params)


# ----------------------------------------------------------------------------
# Module hierarchy mirroring SurrealGAN/modules.py
# ----------------------------------------------------------------------------
class TwoInputModule:
    """Abstract base: forward(input1, input2)."""

    def forward(self, input1, input2):
        raise NotImplementedError


class TwoInputLinear(TwoInputModule):
    """Representative two-input sub-module: x1 @ W1 + x2 @ W2 + b."""

    def __init__(self, key, in1, in2, out):
        k1, k2, k3 = jax.random.split(key, 3)
        # f32 master weights (used by the pure-JAX reference).
        self.w1 = jax.random.normal(k1, (in1, out), jnp.float32) * 0.1
        self.w2 = jax.random.normal(k2, (in2, out), jnp.float32) * 0.1
        self.b = jax.random.normal(k3, (1, out), jnp.float32) * 0.1
        self.out_dim = out
        self.activation = None

        in1p, in2p, outp = (_round_up(d, _LANE) for d in (in1, in2, out))
        self.w1_pad = _pad2d(self.w1, in1p, outp, jnp.bfloat16)
        self.w2_pad = _pad2d(self.w2, in2p, outp, jnp.bfloat16)
        self.b_pad = _pad2d(self.b, 1, outp, jnp.float32)

    def fused_layer(self, takes_two):
        if takes_two:
            return ((True, self.activation, self.out_dim),
                    (self.w1_pad, self.w2_pad, self.b_pad))
        return ((False, self.activation, self.out_dim),
                (self.w1_pad, self.b_pad))

    def forward(self, input1, input2):
        # Stand-alone path: single-layer fused kernel launch.
        return _fused_forward(input1, input2, [self.fused_layer(True)])


class LinearTanh:
    """Representative single-input sub-module: tanh(x @ W + b)."""

    def __init__(self, key, in_dim, out_dim):
        k1, k2 = jax.random.split(key, 2)
        self.w = jax.random.normal(k1, (in_dim, out_dim), jnp.float32) * 0.1
        self.b = jax.random.normal(k2, (1, out_dim), jnp.float32) * 0.1
        self.out_dim = out_dim
        self.activation = "tanh"

        inp, outp = _round_up(in_dim, _LANE), _round_up(out_dim, _LANE)
        self.w_pad = _pad2d(self.w, inp, outp, jnp.bfloat16)
        self.b_pad = _pad2d(self.b, 1, outp, jnp.float32)

    def fused_layer(self, takes_two):
        return ((False, self.activation, self.out_dim), (self.w_pad, self.b_pad))

    def forward(self, input1):
        # No dummy x2: single-input segments never allocate/DMA an x2 operand.
        return _fused_forward(input1, None, [self.fused_layer(False)])


class TwoInputSequential(TwoInputModule):
    """Exact forward semantics of the PyTorch TwoInputSequential container,
    with consecutive fusable sub-modules executed as one fused Pallas kernel."""

    def __init__(self, *args):
        self._modules = {str(i): m for i, m in enumerate(args)}

    def forward(self, input1, input2):
        cur = input1
        pending = []  # fusable layer descriptors, in dispatch order
        for module in self._modules.values():
            takes_two = isinstance(module, TwoInputModule)
            if hasattr(module, "fused_layer"):
                pending.append(module.fused_layer(takes_two))
            else:
                # Non-fusable module: flush the fused segment, then dispatch
                # exactly like the PyTorch container.
                if pending:
                    cur = _fused_forward(cur, input2, pending)
                    pending = []
                cur = module.forward(cur, input2) if takes_two else module.forward(cur)
        if pending:
            cur = _fused_forward(cur, input2, pending)
        return cur


# ----------------------------------------------------------------------------
# Reference (pure JAX, f32) for correctness checking
# ----------------------------------------------------------------------------
def _reference_forward(seq, x1, x2):
    out = x1
    for module in seq._modules.values():
        if isinstance(module, TwoInputModule):
            out = out @ module.w1 + x2 @ module.w2 + module.b
        else:
            out = jnp.tanh(out @ module.w + module.b)
    return out


if __name__ == "__main__":
    key = jax.random.PRNGKey(0)
    k_in1, k_in2, k_m0, k_m1, k_m2, k_big = jax.random.split(key, 6)

    batch, d1, d2, hidden, d_out = 8, 32, 32, 64, 16

    x1 = jax.random.normal(k_in1, (batch, d1), jnp.float32)
    x2 = jax.random.normal(k_in2, (batch, d2), jnp.float32)

    # Mixes two-input and single-input sub-modules, exercising both dispatch
    # branches of TwoInputSequential.forward; all three layers fuse into one
    # jitted pallas_call.
    seq = TwoInputSequential(
        TwoInputLinear(k_m0, d1, d2, hidden),    # TwoInputModule branch
        LinearTanh(k_m1, hidden, hidden),        # plain-module branch
        TwoInputLinear(k_m2, hidden, d2, d_out)  # TwoInputModule branch again
    )

    out = jax.block_until_ready(seq.forward(x1, x2))
    ref = _reference_forward(seq, x1, x2)
    assert out.shape == (batch, d_out), out.shape
    # bf16 MXU inputs with f32 accumulation -> loosened tolerance vs f32 ref.
    assert jnp.allclose(out, ref, atol=5e-2, rtol=5e-2), "mismatch vs reference"

    # Also exercise the batch-tiled "parallel" grid path (256-row MXU tiles,
    # resident weights, megacore split on v7x).
    big = 512
    xb1 = jax.random.normal(k_big, (big, d1), jnp.float32)
    xb2 = jax.random.normal(k_in2, (big, d2), jnp.float32)
    out_b = jax.block_until_ready(seq.forward(xb1, xb2))
    ref_b = _reference_forward(seq, xb1, xb2)
    assert out_b.shape == (big, d_out), out_b.shape
    assert jnp.allclose(out_b, ref_b, atol=1e-1, rtol=1e-1), \
        "mismatch vs reference (tiled batch)"

    print("KERNEL_OK")
</pallas_src>

<mosaic_0001>
module attributes {stable_mosaic.version = 11 : i64} {
  func.func @kernel(%arg0: i32, %arg1: memref<8x256xbf16, #tpu.memory_space<vmem>>, %arg2: memref<640x128xbf16, #tpu.memory_space<vmem>>, %arg3: memref<1x384xf32, #tpu.memory_space<vmem>>, %arg4: memref<8x128xf32, #tpu.memory_space<vmem>>) attributes {dimension_semantics = [#tpu.dimension_semantics<parallel>], iteration_bounds = array<i64: 1>, scalar_prefetch = 0 : i64, scratch_operands = 0 : i64, tpu.core_type = #tpu.core_type<tc>, window_params = [{transform_indices = @transform_0, window_bounds = array<i64: 8, 256>}, {pipeline_mode = #tpu.pipeline_mode<synchronous>, transform_indices = @transform_1, window_bounds = array<i64: 640, 128>}, {pipeline_mode = #tpu.pipeline_mode<synchronous>, transform_indices = @transform_2, window_bounds = array<i64: 1, 384>}, {transform_indices = @transform_3, window_bounds = array<i64: 8, 128>}]} {
    %c0 = arith.constant 0 : index
    %c0_0 = arith.constant 0 : index
    %0 = vector.load %arg1[%c0, %c0_0] : memref<8x256xbf16, #tpu.memory_space<vmem>>, vector<8x128xbf16>
    %c0_1 = arith.constant 0 : index
    %c128 = arith.constant 128 : index
    %1 = vector.load %arg1[%c0_1, %c128] : memref<8x256xbf16, #tpu.memory_space<vmem>>, vector<8x128xbf16>
    %c128_2 = arith.constant 128 : index
    %c0_3 = arith.constant 0 : index
    %2 = vector.load %arg2[%c128_2, %c0_3] : memref<640x128xbf16, #tpu.memory_space<vmem>>, vector<128x128xbf16>
    %cst = arith.constant dense<0.000000e+00> : vector<8x128xf32>
    %3 = tpu.matmul %1, %2, %cst {dimension_numbers = #tpu.dot_dimension_numbers<[1], [0], [0], [1], [0, 0, 1, 1], [], []>} : vector<8x128xbf16>, vector<128x128xbf16>, vector<8x128xf32> -> vector<8x128xf32>
    %c512 = arith.constant 512 : index
    %c0_4 = arith.constant 0 : index
    %4 = vector.load %arg2[%c512, %c0_4] : memref<640x128xbf16, #tpu.memory_space<vmem>>, vector<128x128xbf16>
    %cst_5 = arith.constant dense<0.000000e+00> : vector<8x128xf32>
    %5 = tpu.matmul %1, %4, %cst_5 {dimension_numbers = #tpu.dot_dimension_numbers<[1], [0], [0], [1], [0, 0, 1, 1], [], []>} : vector<8x128xbf16>, vector<128x128xbf16>, vector<8x128xf32> -> vector<8x128xf32>
    %c0_6 = arith.constant 0 : index
    %c0_7 = arith.constant 0 : index
    %6 = vector.load %arg2[%c0_6, %c0_7] : memref<640x128xbf16, #tpu.memory_space<vmem>>, vector<128x128xbf16>
    %cst_8 = arith.constant dense<0.000000e+00> : vector<8x128xf32>
    %7 = tpu.matmul %0, %6, %cst_8 {dimension_numbers = #tpu.dot_dimension_numbers<[1], [0], [0], [1], [0, 0, 1, 1], [], []>} : vector<8x128xbf16>, vector<128x128xbf16>, vector<8x128xf32> -> vector<8x128xf32>
    %8 = arith.addf %7, %3 : vector<8x128xf32>
    %c0_9 = arith.constant 0 : index
    %c0_10 = arith.constant 0 : index
    %9 = vector.load %arg3[%c0_9, %c0_10] : memref<1x384xf32, #tpu.memory_space<vmem>>, vector<1x128xf32>
    %10 = vector.broadcast %9 : vector<1x128xf32> to vector<8x128xf32>
    %11 = arith.addf %8, %10 : vector<8x128xf32>
    %12 = arith.truncf %11 : vector<8x128xf32> to vector<8x128xbf16>
    %c256 = arith.constant 256 : index
    %c0_11 = arith.constant 0 : index
    %13 = vector.load %arg2[%c256, %c0_11] : memref<640x128xbf16, #tpu.memory_space<vmem>>, vector<128x128xbf16>
    %cst_12 = arith.constant dense<0.000000e+00> : vector<8x128xf32>
    %14 = tpu.matmul %12, %13, %cst_12 {dimension_numbers = #tpu.dot_dimension_numbers<[1], [0], [0], [1], [0, 0, 1, 1], [], []>} : vector<8x128xbf16>, vector<128x128xbf16>, vector<8x128xf32> -> vector<8x128xf32>
    %c0_13 = arith.constant 0 : index
    %c128_14 = arith.constant 128 : index
    %15 = vector.load %arg3[%c0_13, %c128_14] : memref<1x384xf32, #tpu.memory_space<vmem>>, vector<1x128xf32>
    %16 = vector.broadcast %15 : vector<1x128xf32> to vector<8x128xf32>
    %17 = arith.addf %14, %16 : vector<8x128xf32>
    %18 = math.tanh %17 : vector<8x128xf32>
    %19 = arith.truncf %18 : vector<8x128xf32> to vector<8x128xbf16>
    %c384 = arith.constant 384 : index
    %c0_15 = arith.constant 0 : index
    %20 = vector.load %arg2[%c384, %c0_15] : memref<640x128xbf16, #tpu.memory_space<vmem>>, vector<128x128xbf16>
    %cst_16 = arith.constant dense<0.000000e+00> : vector<8x128xf32>
    %21 = tpu.matmul %19, %20, %cst_16 {dimension_numbers = #tpu.dot_dimension_numbers<[1], [0], [0], [1], [0, 0, 1, 1], [], []>} : vector<8x128xbf16>, vector<128x128xbf16>, vector<8x128xf32> -> vector<8x128xf32>
    %22 = arith.addf %21, %5 : vector<8x128xf32>
    %c0_17 = arith.constant 0 : index
    %c256_18 = arith.constant 256 : index
    %23 = vector.load %arg3[%c0_17, %c256_18] : memref<1x384xf32, #tpu.memory_space<vmem>>, vector<1x128xf32>
    %24 = vector.broadcast %23 : vector<1x128xf32> to vector<8x128xf32>
    %25 = arith.addf %22, %24 : vector<8x128xf32>
    %c0_19 = arith.constant 0 : index
    %c0_20 = arith.constant 0 : index
    %26 = vector.load %arg4[%c0_19, %c0_20] : memref<8x128xf32, #tpu.memory_space<vmem>>, vector<8x128xf32>
    tpu.vector_store %arg4[%c0_19, %c0_20], %25 {strides = array<i32>} : memref<8x128xf32, #tpu.memory_space<vmem>>, vector<8x128xf32>,
    return
  }
  func.func @transform_0(%arg0: i32) -> (i32, i32) {
    %c0_i32 = arith.constant 0 : i32
    %c0_i32_0 = arith.constant 0 : i32
    return %arg0, %c0_i32 : i32, i32
  }
  func.func @transform_1(%arg0: i32) -> (i32, i32) {
    %c0_i32 = arith.constant 0 : i32
    %c0_i32_0 = arith.constant 0 : i32
    %c0_i32_1 = arith.constant 0 : i32
    return %c0_i32, %c0_i32_0 : i32, i32
  }
  func.func @transform_2(%arg0: i32) -> (i32, i32) {
    %c0_i32 = arith.constant 0 : i32
    %c0_i32_0 = arith.constant 0 : i32
    %c0_i32_1 = arith.constant 0 : i32
    return %c0_i32, %c0_i32_0 : i32, i32
  }
  func.func @transform_3(%arg0: i32) -> (i32, i32) {
    %c0_i32 = arith.constant 0 : i32
    %c0_i32_0 = arith.constant 0 : i32
    return %arg0, %c0_i32 : i32, i32
  }
}

</mosaic_0001>

<bundles_post_ra>
// kernel: fn.1
= control target key start
LH: loop header
LB: loop body
LE: loop exit
PB: predicated region body
PF: predicated region fallthrough
CT: control target
= control target key end

     0   :  { %s827_s0 = inlined_call_operand.vmem [shape: bf16[8,256], index: 0, kind: input, shape index: {}]   ;;  %s828_s1 = inlined_call_operand.vmem [shape: bf16[640,128], index: 1, kind: input, shape index: {}]   ;;  %s829_s2 = inlined_call_operand.vmem [shape: f32[1,384], index: 2, kind: input, shape index: {}]   ;;  %s830_s3 = inlined_call_operand.hbm [shape: f32[8,128], index: 3, kind: output, shape index: {}]  }
   0x1   :  { %v603_v0 = vld [vmem:[%s828_s1 + $0x78] sm:$0xff]  ;;  %v602_v2 = vld [vmem:[%s828_s1 + $0x70] sm:$0xff]  ;;  %v601_v4 = vld [vmem:[%s828_s1 + $0x68] sm:$0xff] }
   0x2   :  { %v619_v1 = vld [vmem:[%s828_s1 + $0x38] sm:$0xff]  ;;  %81 = vmatpush.bf16.msra.mxu0 %v603_v0  ;;  %v618_v3 = vld [vmem:[%s828_s1 + $0x30] sm:$0xff]  ;;  %v617_v5 = vld [vmem:[%s828_s1 + $0x28] sm:$0xff] }
   0x3   :  { %235 = vmatpush.bf16.msra.mxu2 %v619_v1  ;;  %v627_v6 = vld [vmem:[%s828_s1 + $0xb8] sm:$0xff]  ;;  %v626_v7 = vld [vmem:[%s828_s1 + $0xb0] sm:$0xff] }
   0x4   :  { %322 = vmatpush.bf16.msra.mxu3 %v627_v6 }
   0x6   :  { %82 = vmatpush.bf16.msra.mxu0 %v602_v2 }
   0x7   :  { %236 = vmatpush.bf16.msra.mxu2 %v618_v3 }
   0x8   :  { %8 = vsyncpa [#allocation3], 0  ;;  %v600_v8 = vld [vmem:[%s828_s1 + $0x60] sm:$0xff]  ;;  %323 = vmatpush.bf16.msra.mxu3 %v626_v7  ;;  %v625_v10 = vld [vmem:[%s828_s1 + $0xa8] sm:$0xff]  ;;  %s427_s22 = sshll.u32 %s830_s3, 4  ;;  %s428_s22 = int_to_ptr.hbm [resolvable:$true] %s427_s22 }
   0x9   :  { %v616_v9 = vld [vmem:[%s828_s1 + $0x20] sm:$0xff]  ;;  %v599_v11 = vld [vmem:[%s828_s1 + $0x58] sm:$0xff]  ;;  %v598_v14 = vld [vmem:[%s828_s1 + $0x50] sm:$0xff] }
   0xa   :  { %83 = vmatpush.bf16.msra.mxu0 %v601_v4  ;;  %v615_v12 = vld [vmem:[%s828_s1 + $0x18] sm:$0xff]  ;;  %v624_v13 = vld [vmem:[%s828_s1 + $0xa0] sm:$0xff]  ;;  %v614_v15 = vld [vmem:[%s828_s1 + $0x10] sm:$0xff] }
   0xb   :  { %237 = vmatpush.bf16.msra.mxu2 %v617_v5  ;;  %v623_v16 = vld [vmem:[%s828_s1 + $0x98] sm:$0xff]  ;;  %v597_v17 = vld [vmem:[%s828_s1 + $0x48] sm:$0xff]  ;;  %v596_v19 = vld [vmem:[%s828_s1 + $0x40] sm:$0xff] }
   0xc   :  { %324 = vmatpush.bf16.msra.mxu3 %v625_v10  ;;  %v613_v18 = vld [vmem:[%s828_s1 + $0x8] sm:$0xff]  ;;  %v612_v20 = vld [vmem:[%s828_s1] sm:$0xff]  ;;  %v622_v23 = vld [vmem:[%s828_s1 + $0x90] sm:$0xff] }
   0xd   :  { %v16_v21 = vld [vmem:[%s827_s0 + $0x4] sm:$0xf]  ;;  %v15_v22 = vld [vmem:[%s827_s0] sm:$0xf]  ;;  %v621_v24 = vld [vmem:[%s828_s1 + $0x88] sm:$0xff] }
   0xe   :  { %84 = vmatpush.bf16.msra.mxu0 %v600_v8  ;;  %v620_v25 = vld [vmem:[%s828_s1 + $0x80] sm:$0xff]  ;;  %v611_v26 = vld [vmem:[%s828_s1 + $0x138] sm:$0xff]  ;;  %v610_v28 = vld [vmem:[%s828_s1 + $0x130] sm:$0xff] }
   0xf   :  { %238 = vmatpush.bf16.msra.mxu2 %v616_v9  ;;  %v635_v27 = vld [vmem:[%s828_s1 + $0xf8] sm:$0xff]  ;;  %158 = vmatpush.bf16.msra.mxu1 %v611_v26  ;;  %v634_v29 = vld [vmem:[%s828_s1 + $0xf0] sm:$0xff]  ;;  %v609_v30 = vld [vmem:[%s828_s1 + $0x128] sm:$0xff] }
  0x10   :  { %325 = vmatpush.bf16.msra.mxu3 %v624_v13  ;;  %v633_v31 = vld [vmem:[%s828_s1 + $0xe8] sm:$0xff]  ;;  %v608_v32 = vld [vmem:[%s828_s1 + $0x120] sm:$0xff]  ;;  %v607_v34 = vld [vmem:[%s828_s1 + $0x118] sm:$0xff] }
  0x11   :  { %v632_v33 = vld [vmem:[%s828_s1 + $0xe0] sm:$0xff]  ;;  %v631_v35 = vld [vmem:[%s828_s1 + $0xd8] sm:$0xff]  ;;  %v606_v37 = vld [vmem:[%s828_s1 + $0x110] sm:$0xff] }
  0x12   :  { %85 = vmatpush.bf16.msra.mxu0 %v599_v11  ;;  %v605_v38 = vld [vmem:[%s828_s1 + $0x108] sm:$0xff]  ;;  %v637_v39 = vld [vmem:[%s829_s2] ss:$0 sm:$0xff]  ;;  %v630_v47 = vld [vmem:[%s828_s1 + $0xd0] sm:$0xff] }
  0x13   :  { %239 = vmatpush.bf16.msra.mxu2 %v615_v12  ;;  %159 = vmatpush.bf16.msra.mxu1 %v610_v28  ;;  %v604_v46 = vld [vmem:[%s828_s1 + $0x100] sm:$0xff]  ;;  %v629_v48 = vld [vmem:[%s828_s1 + $0xc8] sm:$0xff] }
  0x14   :  { %326 = vmatpush.bf16.msra.mxu3 %v623_v16  ;;  %v628_v49 = vld [vmem:[%s828_s1 + $0xc0] sm:$0xff]  ;;  %s668_s1 = smov [#allocation2]  }
  0x15   :  { %v638_v50 = vld [vmem:[%s829_s2 + $0x1] ss:$0 sm:$0xff]  ;;  %v639_v58 = vld [vmem:[%s829_s2 + $0x2] ss:$0 sm:$0xff]  ;;  %s425_s19 = sshll.u32 %s668_s1, 4  ;;  %s426_s19 = int_to_ptr.vmem [resolvable:$true] %s425_s19 }
  0x16   :  { %86 = vmatpush.bf16.msra.mxu0 %v598_v14 }
  0x17   :  { %240 = vmatpush.bf16.msra.mxu2 %v614_v15  ;;  %160 = vmatpush.bf16.msra.mxu1 %v609_v30 }
  0x18   :  { %327 = vmatpush.bf16.msra.mxu3 %v622_v23 }
  0x1a   :  { %87 = vmatpush.bf16.msra.mxu0 %v597_v17 }
  0x1b   :  { %241 = vmatpush.bf16.msra.mxu2 %v613_v18  ;;  %161 = vmatpush.bf16.msra.mxu1 %v608_v32 }
  0x1c   :  { %328 = vmatpush.bf16.msra.mxu3 %v621_v24 }
  0x1e   :  { %88 = vmatpush.bf16.msra.mxu0 %v596_v19 }
  0x1f   :  { %242 = vmatpush.bf16.msra.mxu2 %v612_v20  ;;  %162 = vmatpush.bf16.msra.mxu1 %v607_v34 }
  0x20   :  { %329 = vmatpush.bf16.msra.mxu3 %v620_v25 }
  0x21   :  { %89 = vmatmul.bf16.vlgmr.msra.gmra.mxu0 %v16_v21 }
  0x22   :  { %243 = vmatmul.bf16.vlgmr.msra.gmra.mxu2 %v15_v22  ;;  %401 = vmatpush.bf16.msrb.mxu0 %v635_v27 }
  0x23   :  { %163 = vmatpush.bf16.msra.mxu1 %v606_v37 }
  0x26   :  { %402 = vmatpush.bf16.msrb.mxu0 %v634_v29 }
  0x27   :  { %164 = vmatpush.bf16.msra.mxu1 %v605_v38 }
  0x2a   :  { %403 = vmatpush.bf16.msrb.mxu0 %v633_v31 }
  0x2b   :  { %165 = vmatpush.bf16.msra.mxu1 %v604_v46 }
  0x2e   :  { %404 = vmatpush.bf16.msrb.mxu0 %v632_v33  ;;  %166 = vmatmul.bf16.vlgmr.msra.gmra.mxu1 %v16_v21 }
  0x32   :  { %405 = vmatpush.bf16.msrb.mxu0 %v631_v35 }
  0x36   :  { %406 = vmatpush.bf16.msrb.mxu0 %v630_v47 }
  0x3a   :  { %407 = vmatpush.bf16.msrb.mxu0 %v629_v48 }
  0x3e   :  { %408 = vmatpush.bf16.msrb.mxu0 %v628_v49 }
  0x9e   :  { %v90_v36 = vpop.f32.mrf.mxu0 }
  0xa5   :  { %v244_v40 = vpop.f32.mrf.mxu2 }
  0xa6   :  { %v245_v41 = vadd.f32 %v244_v40, %v90_v36  ;;  %v92_v42 = vpop.f32.mrf.mxu0 }
  0xa8   :  { %v252_v43 = vadd.f32 %v637_v39, %v245_v41 }
  0xaa   :  { %v253_v44 = vpack.c.bf16 %v252_v43, %v252_v43 }
  0xab   :  { %v167_v56 = vpop.f32.mrf.mxu1 }
  0xac   :  { %330 = vmatmul.bf16.vlgmr.msra.gmra.mxu3 %v253_v44 }
  0xad   :  { %v246_v45 = vpop.f32.mrf.mxu2 }
  0xb3   :  { %v169_v57 = vpop.f32.mrf.mxu1 }
 0x12f   :  { %v331_v51 = vpop.f32.mrf.mxu3 }
 0x130   :  { %v332_v52 = vadd.f32 %v638_v50, %v331_v51 }
 0x132   :  { %640 = vtanh.f32 %v332_v52 }
 0x137   :  { %v333_v53 = vpop.f32.mrf.mxu3 }
 0x138   :  { %v641_v54 = vpop.eup %640 }
 0x139   :  { %v336_v55 = vpack.c.bf16 %v641_v54, %v641_v54 }
 0x13b   :  { %409 = vmatmul.bf16.vlgmr.msrb.gmra.mxu0 %v336_v55 }
 0x1b8   :  { %v410_v59 = vpop.f32.mrf.mxu0 }
 0x1b9   :  { %v411_v60 = vadd.f32 %v410_v59, %v167_v56 }
 0x1bb   :  { %v418_v61 = vadd.f32 %v639_v58, %v411_v60 }
 0x1bd   :  { %419 = vst [vmem:[#allocation2] sm:$0xff] %v418_v61 }
 0x1be   :  { %430 = dma.vmem_to_hbm [thread:$0]  %s426_s19, 128, %s428_s22, [#allocation3]  }
 0x1c0   :  { %v412_v62 = vpop.f32.mrf.mxu0 }
 0x1c1   :  { %666 = dma.done.wait [#allocation3], 128  }
 0x1c2   :  { %667 = vsyncadd [#allocation3], 4294967168 }
 0x1c3   :  { %435 = vsyncpa [#allocation3], 1 }

</bundles_post_ra>
